<compile_context>
chip_gen: v7x
topology: tpu7x:2x2x1
jax: 0.10.0
libtpu: 0.0.40
codegen_flags: <defaults>
</compile_context>

<pallas_src>
import jax
import jax.numpy as jnp
from jax.experimental import pallas as pl
from jax.experimental.pallas import tpu as pltpu

STATE_DIM = 12
ACTION_DIM = 4
H1 = 64
H2 = 32


def _round_up(x, m):
    return ((x + m - 1) // m) * m


def critic_kernel(x_ref, w1_ref, b1_ref, w2_ref, b2_ref, w3_ref, b3_ref, o_ref):
    # fc1: relu(x @ W1 + b1), x = [state, action] already concatenated (bf16).
    h1 = jnp.dot(x_ref[...], w1_ref[...], preferred_element_type=jnp.float32)
    h1 = jnp.maximum(h1 + b1_ref[...], 0.0)          # f32 elementwise
    # fc2: relu(h1 @ W2 + b2)
    w2 = w2_ref[...]
    h2 = jnp.dot(h1.astype(w2.dtype), w2, preferred_element_type=jnp.float32)
    h2 = jnp.maximum(h2 + b2_ref[...], 0.0)
    # fc3: N=1 -> do it on the VPU (multiply + lane reduce) instead of the MXU.
    out = jnp.sum(h2 * w3_ref[...], axis=-1, keepdims=True) + b3_ref[0]
    o_ref[...] = out.astype(o_ref.dtype)


def critic_forward(state, action, params, *, block_b=1024,
                   matmul_dtype=jnp.bfloat16):
    """state: (B, state_dim), action: (B, action_dim) -> (B, 1) float32."""
    w1, b1, w2, b2, w3_row, b3 = params
    B = state.shape[0]
    d_in, h1_dim = w1.shape
    h2_dim = w2.shape[1]
    assert d_in == state.shape[1] + action.shape[1]

    # Concatenate + cast once in the wrapper so fc1 is a single MXU matmul.
    x = jnp.concatenate([state, action], axis=1).astype(matmul_dtype)
    w1 = w1.astype(matmul_dtype)
    w2 = w2.astype(matmul_dtype)
    b1 = b1.astype(jnp.float32)
    b2 = b2.astype(jnp.float32)
    w3_row = w3_row.astype(jnp.float32)
    b3 = b3.reshape((1,)).astype(jnp.float32)

    # Batch tile: multiple of 8 sublanes; pad B up to a whole number of tiles.
    tile_b = min(block_b, _round_up(B, 8))
    b_pad = _round_up(B, tile_b)
    if b_pad != B:
        x = jnp.pad(x, ((0, b_pad - B), (0, 0)))
    grid = (b_pad // tile_b,)

    itemsize = jnp.dtype(matmul_dtype).itemsize
    cost = pl.CostEstimate(
        flops=2 * b_pad * (d_in * h1_dim + h1_dim * h2_dim + h2_dim),
        transcendentals=0,
        bytes_accessed=(b_pad * d_in * itemsize                # activations in
                        + (d_in * h1_dim + h1_dim * h2_dim) * itemsize  # weights
                        + (h1_dim + h2_dim + h2_dim + 1) * 4            # biases + w3
                        + b_pad * 4))                                   # output

    resident = lambda i: (0, 0)   # constant index_map: stays in VMEM across steps
    out = pl.pallas_call(
        critic_kernel,
        out_shape=jax.ShapeDtypeStruct((b_pad, 1), jnp.float32),
        grid=grid,
        in_specs=[
            pl.BlockSpec((tile_b, d_in), lambda i: (i, 0)),        # x tile
            pl.BlockSpec((d_in, h1_dim), resident),                # W1
            pl.BlockSpec((1, h1_dim), resident),                   # b1
            pl.BlockSpec((h1_dim, h2_dim), resident),              # W2
            pl.BlockSpec((1, h2_dim), resident),                   # b2
            pl.BlockSpec((1, h2_dim), resident),                   # w3 (row)
            pl.BlockSpec(memory_space=pltpu.MemorySpace.SMEM),     # b3 scalar
        ],
        out_specs=pl.BlockSpec((tile_b, 1), lambda i: (i, 0)),
        compiler_params=pltpu.CompilerParams(
            dimension_semantics=("parallel",)),
        cost_estimate=cost,
    )(x, w1, b1, w2, b2, w3_row, b3)
    return out[:B]


def init_params(key, state_dim, action_dim):
    """Deterministic synthetic init (PyTorch-style uniform fan-in bounds)."""
    def linear(k, fan_in, fan_out):
        k_w, k_b = jax.random.split(k)
        bound = 1.0 / jnp.sqrt(fan_in)
        # stored as (in, out) so the kernel computes x @ W
        w = jax.random.uniform(k_w, (fan_in, fan_out), jnp.float32, -bound, bound)
        b = jax.random.uniform(k_b, (1, fan_out), jnp.float32, -bound, bound)
        return w, b

    k1, k2, k3 = jax.random.split(key, 3)
    w1, b1 = linear(k1, state_dim + action_dim, H1)
    w2, b2 = linear(k2, H1, H2)
    w3, b3 = linear(k3, H2, 1)
    w3_row = w3.T                      # (1, 32): row layout for the VPU fc3
    return (w1, b1, w2, b2, w3_row, b3.reshape((1,)))


def critic_ref(state, action, params, matmul_dtype=None):
    """Pure-JAX reference. matmul_dtype=None -> full f32 (PyTorch semantics)."""
    w1, b1, w2, b2, w3_row, b3 = params
    x = jnp.concatenate([state, action], axis=1)
    if matmul_dtype is not None:
        x, w1, w2 = (x.astype(matmul_dtype), w1.astype(matmul_dtype),
                     w2.astype(matmul_dtype))
    h1 = jax.nn.relu(jnp.dot(x, w1, preferred_element_type=jnp.float32) + b1)
    if matmul_dtype is not None:
        h1 = h1.astype(matmul_dtype)
    h2 = jax.nn.relu(jnp.dot(h1, w2, preferred_element_type=jnp.float32) + b2)
    return jnp.dot(h2, w3_row.T, preferred_element_type=jnp.float32) + b3.reshape(1, 1)


if __name__ == "__main__":
    key = jax.random.PRNGKey(0)
    B, state_dim, action_dim = 8, STATE_DIM, ACTION_DIM

    k_p, k_s, k_a = jax.random.split(key, 3)
    params = init_params(k_p, state_dim, action_dim)
    state = jax.random.normal(k_s, (B, state_dim), jnp.float32)
    action = jax.random.normal(k_a, (B, action_dim), jnp.float32)

    fwd = jax.jit(critic_forward, static_argnames=("block_b", "matmul_dtype"))

    out = jax.block_until_ready(fwd(state, action, params))
    assert out.shape == (B, 1)
    ref_mixed = critic_ref(state, action, params, matmul_dtype=jnp.bfloat16)
    ref_f32 = critic_ref(state, action, params)
    assert jnp.allclose(out, ref_mixed, atol=1e-3, rtol=1e-3), "mismatch vs bf16 ref"
    assert jnp.allclose(out, ref_f32, atol=5e-2, rtol=5e-2), "mismatch vs f32 ref"

    # Exercise a multi-step grid with batch padding (B not a multiple of tile).
    B2 = 40
    k_s2, k_a2 = jax.random.split(jax.random.PRNGKey(1))
    state2 = jax.random.normal(k_s2, (B2, state_dim), jnp.float32)
    action2 = jax.random.normal(k_a2, (B2, action_dim), jnp.float32)
    out2 = jax.block_until_ready(fwd(state2, action2, params, block_b=16))
    ref2 = critic_ref(state2, action2, params, matmul_dtype=jnp.bfloat16)
    assert out2.shape == (B2, 1)
    assert jnp.allclose(out2, ref2, atol=1e-3, rtol=1e-3), "mismatch (gridded)"

    print("KERNEL_OK")
</pallas_src>

<mosaic_0001>
module attributes {stable_mosaic.version = 11 : i64} {
  func.func @critic_kernel(%arg0: i32, %arg1: memref<8x16xbf16, #tpu.memory_space<vmem>>, %arg2: memref<16x64xbf16, #tpu.memory_space<vmem>>, %arg3: memref<1x64xf32, #tpu.memory_space<vmem>>, %arg4: memref<64x32xbf16, #tpu.memory_space<vmem>>, %arg5: memref<1x32xf32, #tpu.memory_space<vmem>>, %arg6: memref<1x32xf32, #tpu.memory_space<vmem>>, %arg7: memref<1xf32, #tpu.memory_space<smem>>, %arg8: memref<8x1xf32, #tpu.memory_space<vmem>>) attributes {dimension_semantics = [#tpu.dimension_semantics<parallel>], iteration_bounds = array<i64: 1>, scalar_prefetch = 0 : i64, scratch_operands = 0 : i64, tpu.core_type = #tpu.core_type<tc>, window_params = [{transform_indices = @transform_0, window_bounds = array<i64: 8, 16>}, {pipeline_mode = #tpu.pipeline_mode<synchronous>, transform_indices = @transform_1, window_bounds = array<i64: 16, 64>}, {pipeline_mode = #tpu.pipeline_mode<synchronous>, transform_indices = @transform_2, window_bounds = array<i64: 1, 64>}, {pipeline_mode = #tpu.pipeline_mode<synchronous>, transform_indices = @transform_3, window_bounds = array<i64: 64, 32>}, {pipeline_mode = #tpu.pipeline_mode<synchronous>, transform_indices = @transform_4, window_bounds = array<i64: 1, 32>}, {pipeline_mode = #tpu.pipeline_mode<synchronous>, transform_indices = @transform_5, window_bounds = array<i64: 1, 32>}, {transform_indices = @transform_6, window_bounds = array<i64: 1>}, {transform_indices = @transform_7, window_bounds = array<i64: 8, 1>}]} {
    %c0 = arith.constant 0 : index
    %c0_0 = arith.constant 0 : index
    %0 = vector.load %arg1[%c0, %c0_0] : memref<8x16xbf16, #tpu.memory_space<vmem>>, vector<8x16xbf16>
    %c0_1 = arith.constant 0 : index
    %c0_2 = arith.constant 0 : index
    %1 = vector.load %arg2[%c0_1, %c0_2] : memref<16x64xbf16, #tpu.memory_space<vmem>>, vector<16x64xbf16>
    %cst = arith.constant dense<0.000000e+00> : vector<8x64xf32>
    %2 = tpu.matmul %0, %1, %cst {dimension_numbers = #tpu.dot_dimension_numbers<[1], [0], [0], [1], [0, 0, 1, 1], [], []>} : vector<8x16xbf16>, vector<16x64xbf16>, vector<8x64xf32> -> vector<8x64xf32>
    %c0_3 = arith.constant 0 : index
    %c0_4 = arith.constant 0 : index
    %3 = vector.load %arg3[%c0_3, %c0_4] : memref<1x64xf32, #tpu.memory_space<vmem>>, vector<1x64xf32>
    %4 = vector.broadcast %3 : vector<1x64xf32> to vector<8x64xf32>
    %5 = arith.addf %2, %4 : vector<8x64xf32>
    %cst_5 = arith.constant 0.000000e+00 : f32
    %6 = vector.broadcast %cst_5 : f32 to vector<8x64xf32>
    %7 = arith.maximumf %5, %6 : vector<8x64xf32>
    %c0_6 = arith.constant 0 : index
    %c0_7 = arith.constant 0 : index
    %8 = vector.load %arg4[%c0_6, %c0_7] : memref<64x32xbf16, #tpu.memory_space<vmem>>, vector<64x32xbf16>
    %9 = arith.truncf %7 : vector<8x64xf32> to vector<8x64xbf16>
    %cst_8 = arith.constant dense<0.000000e+00> : vector<8x32xf32>
    %10 = tpu.matmul %9, %8, %cst_8 {dimension_numbers = #tpu.dot_dimension_numbers<[1], [0], [0], [1], [0, 0, 1, 1], [], []>} : vector<8x64xbf16>, vector<64x32xbf16>, vector<8x32xf32> -> vector<8x32xf32>
    %c0_9 = arith.constant 0 : index
    %c0_10 = arith.constant 0 : index
    %11 = vector.load %arg5[%c0_9, %c0_10] : memref<1x32xf32, #tpu.memory_space<vmem>>, vector<1x32xf32>
    %12 = vector.broadcast %11 : vector<1x32xf32> to vector<8x32xf32>
    %13 = arith.addf %10, %12 : vector<8x32xf32>
    %cst_11 = arith.constant 0.000000e+00 : f32
    %14 = vector.broadcast %cst_11 : f32 to vector<8x32xf32>
    %15 = arith.maximumf %13, %14 : vector<8x32xf32>
    %c0_12 = arith.constant 0 : index
    %c0_13 = arith.constant 0 : index
    %16 = vector.load %arg6[%c0_12, %c0_13] : memref<1x32xf32, #tpu.memory_space<vmem>>, vector<1x32xf32>
    %17 = vector.broadcast %16 : vector<1x32xf32> to vector<8x32xf32>
    %18 = arith.mulf %15, %17 : vector<8x32xf32>
    %cst_14 = arith.constant dense<0.000000e+00> : vector<8xf32>
    %19 = vector.multi_reduction <add>, %18, %cst_14 [1] : vector<8x32xf32> to vector<8xf32>
    %20 = vector.shape_cast %19 : vector<8xf32> to vector<8x1xf32>
    %c0_15 = arith.constant 0 : index
    %21 = memref.load %arg7[%c0_15] : memref<1xf32, #tpu.memory_space<smem>>
    %22 = vector.broadcast %21 : f32 to vector<8x1xf32>
    %23 = arith.addf %20, %22 : vector<8x1xf32>
    %c0_16 = arith.constant 0 : index
    %c0_17 = arith.constant 0 : index
    %24 = vector.load %arg8[%c0_16, %c0_17] : memref<8x1xf32, #tpu.memory_space<vmem>>, vector<8x1xf32>
    tpu.vector_store %arg8[%c0_16, %c0_17], %23 {strides = array<i32>} : memref<8x1xf32, #tpu.memory_space<vmem>>, vector<8x1xf32>,
    return
  }
  func.func @transform_0(%arg0: i32) -> (i32, i32) {
    %c0_i32 = arith.constant 0 : i32
    %c0_i32_0 = arith.constant 0 : i32
    return %arg0, %c0_i32 : i32, i32
  }
  func.func @transform_1(%arg0: i32) -> (i32, i32) {
    %c0_i32 = arith.constant 0 : i32
    %c0_i32_0 = arith.constant 0 : i32
    %c0_i32_1 = arith.constant 0 : i32
    return %c0_i32, %c0_i32_0 : i32, i32
  }
  func.func @transform_2(%arg0: i32) -> (i32, i32) {
    %c0_i32 = arith.constant 0 : i32
    %c0_i32_0 = arith.constant 0 : i32
    %c0_i32_1 = arith.constant 0 : i32
    return %c0_i32, %c0_i32_0 : i32, i32
  }
  func.func @transform_3(%arg0: i32) -> (i32, i32) {
    %c0_i32 = arith.constant 0 : i32
    %c0_i32_0 = arith.constant 0 : i32
    %c0_i32_1 = arith.constant 0 : i32
    return %c0_i32, %c0_i32_0 : i32, i32
  }
  func.func @transform_4(%arg0: i32) -> (i32, i32) {
    %c0_i32 = arith.constant 0 : i32
    %c0_i32_0 = arith.constant 0 : i32
    %c0_i32_1 = arith.constant 0 : i32
    return %c0_i32, %c0_i32_0 : i32, i32
  }
  func.func @transform_5(%arg0: i32) -> (i32, i32) {
    %c0_i32 = arith.constant 0 : i32
    %c0_i32_0 = arith.constant 0 : i32
    %c0_i32_1 = arith.constant 0 : i32
    return %c0_i32, %c0_i32_0 : i32, i32
  }
  func.func @transform_6(%arg0: i32) -> i32 {
    %c0_i32 = arith.constant 0 : i32
    %c0_i32_0 = arith.constant 0 : i32
    return %c0_i32 : i32
  }
  func.func @transform_7(%arg0: i32) -> (i32, i32) {
    %c0_i32 = arith.constant 0 : i32
    %c0_i32_0 = arith.constant 0 : i32
    return %arg0, %c0_i32 : i32, i32
  }
}

</mosaic_0001>

<bundles_post_ra>
// kernel: critic_forward.1
= control target key start
LH: loop header
LB: loop body
LE: loop exit
PB: predicated region body
PF: predicated region fallthrough
CT: control target
= control target key end

     0   :  { %v237_v0 = vmov 0.0   ;;  %vm238_vm0 = vmmov 0   ;;  %vm44_vm1 = vcmask 130048   ;;  %vm129_vm2 = vcmask 523264   ;;  %s312_s1 = inlined_call_operand.vmem [shape: bf16[16,64], index: 1, kind: input, shape index: {}]   ;;  %s313_s0 = inlined_call_operand.vmem [shape: bf16[8,16], index: 0, kind: input, shape index: {}]   ;;  %s314_s3 = inlined_call_operand.vmem [shape: bf16[64,32], index: 3, kind: input, shape index: {}]   ;;  %s315_s2 = inlined_call_operand.vmem [shape: f32[1,64], index: 2, kind: input, shape index: {}]   ;;  %s316_s4 = inlined_call_operand.vmem [shape: f32[1,32], index: 4, kind: input, shape index: {}]   ;;  %s317_s5 = inlined_call_operand.vmem [shape: f32[1,32], index: 5, kind: input, shape index: {}]   ;;  %s318_s6 = inlined_call_operand.<no memory space> [shape: f32[1], index: 6, kind: input, shape index: {}]   ;;  %s319_s7 = inlined_call_operand.vmem [shape: f32[8,1], index: 7, kind: output, shape index: {}]  }
   0x1   :  { %212 = vmatprep.subr.bf16.mxu0 %v237_v0  ;;  %v232_v1 = vld [vmem:[%s312_s1] sm:$0xff]   ;;  %214 = vmatprep.mubr.msk.bf16.mxu0 %vm238_vm0, %v237_v0  ;;  %v234_v4 = vld [vmem:[%s314_s3 + $0x8] sm:$0xff]   ;;  %v235_v5 = vld [vmem:[%s314_s3 + $0x10] sm:$0xff]   ;;  %vm182_vm3 = vcmask 261120   ;;  %v187_v25 = vstv %s318_s6  ;;  %vm189_vm4 = vcmask 7168  }
   0x2   :  { %v28_v2 = vld [vmem:[%s313_s0] sm:$0xf]  ;;  %218 = vmatprep.subr.bf16.mxu1 %v237_v0  ;;  %226 = vmatprep.mubr.msk.bf16.mxu1 %vm238_vm0, %v237_v0  ;;  %v236_v6 = vld [vmem:[%s314_s3 + $0x18] sm:$0xff]  }
   0x3   :  { %213 = vmatpush3.bf16.msra.mxu0 %v232_v1  ;;  %v233_v3 = vld [vmem:[%s314_s3] sm:$0xff]  }
   0x4   :  { %219 = vmatpush3.bf16.msra.mxu1 %v233_v3  ;;  %v195_v7 = vld [vmem:[%s315_s2] ss:$0 sm:$0xff] }
   0x5   :  { %220 = vmatprep.subr.bf16.mxu1 %v237_v0  ;;  %v198_v15 = vld [vmem:[%s316_s4] ss:$0 sm:$0xff] }
   0x6   :  { %215 = vmatmul.mubr.msk.bf16.vlgmr.msra.gmra.mrb[0].mxu0 %vm44_vm1, %v28_v2  ;;  %v204_v20 = vld [vmem:[%s317_s5] ss:$0 sm:$0xff] }
   0x8   :  { %221 = vmatpush3.bf16.msra.mxu1 %v234_v4 }
   0x9   :  { %222 = vmatprep.subr.bf16.mxu1 %v237_v0 }
   0xc   :  { %223 = vmatpush3.bf16.msra.mxu1 %v235_v5 }
   0xd   :  { %224 = vmatprep.subr.bf16.mxu1 %v237_v0 }
  0x10   :  { %225 = vmatpush3.bf16.msra.mxu1 %v236_v6 }
  0xd9   :  { %v82_v8 = vpop.f32.mrb[0].mxu0 }
  0xda   :  { %v83_v9 = vadd.f32 %v195_v7, %v82_v8  ;;  %v216_v10 = vpop.f32.mrb[1].mxu0 }
  0xdb   :  { %v85_v11 = vpop.f32.mrb[2].mxu0 }
  0xdc   :  { %v88_v12 = vmax.f32 %v83_v9, 0.0  ;;  %v217_v13 = vpop.f32.mrb[3].mxu0 }
  0xde   :  { %v97_v14 = vpack.c.bf16 %v88_v12, %v88_v12 }
  0xe0   :  { %227 = vmatmul.mubr.msk.bf16.vlgmr.msra.gmra.mrb[0].mxu1 %vm129_vm2, %v97_v14 }
 0x1b3   :  { %v167_v16 = vpop.f32.mrb[0].mxu1 }
 0x1b4   :  { %v168_v17 = vadd.f32 %v198_v15, %v167_v16  ;;  %v228_v18 = vpop.f32.mrb[1].mxu1 }
 0x1b5   :  { %v170_v19 = vpop.f32.mrb[2].mxu1 }
 0x1b6   :  { %v173_v21 = vmax.f32 %v168_v17, 0.0  ;;  %v229_v22 = vpop.f32.mrb[3].mxu1 }
 0x1b8   :  { %v181_v23 = vmul.f32 %v204_v20, %v173_v21 }
 0x1ba   :  { %v183_v24 = vsel %vm182_vm3, %v181_v23, 0.0 }
 0x1bb   :  { %184 = vadd.xlane.f32.xlu0 %v183_v24 }
 0x248   :  { %v185_v26 = vpop.xlane.xlu0 %184 }
 0x249   :  { %v188_v27 = vadd.f32 %v187_v25, %v185_v26 }
 0x24b   :  { %190 = vst.msk [vmem:[%s319_s7] sm:$0xff] %vm189_vm4, %v188_v27 }

</bundles_post_ra>
